<compile_context>
chip_gen: v5e
topology: v5e:2x2
jax: 0.10.0
libtpu: 0.0.40
codegen_flags: <defaults>
</compile_context>

<pallas_src>
import numpy as np
import jax
import jax.numpy as jnp
from jax.experimental import pallas as pl
from jax.experimental.pallas import tpu as pltpu

# ----------------------------- module hyperparams -----------------------------
NUM_ATOM_TYPE = 7          # columns 0..6 of ft (used as float one-hot)
HYB_NUM = 3                # hybridization vocabulary
HYB_DIM = 8                # hybridization embedding dim
HYB_COL = 9                # hybridization column in ft
BIN_FEAT = 7               # number of binary features
BED = 4                    # binary embedding dim
SCALAR_FEAT = 3            # columns 10..12
BIN_COLS = (7, 8, 13, 14, 15, 16, 17)
ATOM_IN = NUM_ATOM_TYPE + HYB_DIM + BED * BIN_FEAT + SCALAR_FEAT  # 46

D_CONT = 8                 # atom_dim_list[0] : continuous residue scalars
D_VEC = 9                  # atom_dim_list[1] : 3 xyz vectors
N_CAT = 20                 # atom_dim_list[2] : residue categories
NS = 32                    # shared hidden size
D_TOT = D_CONT + D_VEC + 1  # = 18 == ft width (shared by both encoders)

OUT_DIM = NS + D_VEC       # 41
SQRT3 = 3.0 ** 0.5

# packed-constant column layout (single (64, CW) array, values transposed)
C_CAT = D_TOT                      # 18 : ecat_fold.T   (32, 20)
C_HYB = C_CAT + N_CAT              # 38 : hyb_w.T       (32, 3)
C_BR = C_HYB + HYB_NUM             # 41 : b_res.T       (32, 1)
C_BA = C_BR + 1                    # 42 : b_atom.T      (32, 1)
C_BLK = C_BA + 1                   # 43 : blk           (9, 9)
CW = 64                            # padded width (>= 52)


# ------------------------------- fused kernel ---------------------------------
def fused_kernel(nres_ref, featT_ref, c_ref, outT_ref):
    """Feature-major tile: featT (18, TM) -> outT (41, TM)."""
    f32 = jnp.float32
    featT = featT_ref[...]                              # (18, TM)
    tm = featT.shape[1]
    c = c_ref[...]                                      # (64, CW) packed consts

    w_feat = c[:, 0:D_TOT]                              # (64, 18)  [res | atom]
    w_cat = c[0:NS, C_CAT:C_CAT + N_CAT]                # (32, 20)
    w_hyb = c[0:NS, C_HYB:C_HYB + HYB_NUM]              # (32, 3)
    b_res = c[0:NS, C_BR:C_BR + 1]                      # (32, 1)
    b_atom = c[0:NS, C_BA:C_BA + 1]                     # (32, 1)
    blk = c[0:D_VEC, C_BLK:C_BLK + D_VEC]               # (9, 9) block-diag ones

    # One MXU pass computes the linear term of BOTH branches (rows 0:32 residue,
    # rows 32:64 atom) -- same MXU cost as a single branch since 64 <= 256.
    both = jnp.dot(w_feat, featT, preferred_element_type=f32)   # (64, TM)

    def residue_parts():
        cat = featT[D_TOT - 1:D_TOT, :].astype(jnp.int32)          # (1, TM)
        cat_oh = (jax.lax.broadcasted_iota(jnp.int32, (N_CAT, tm), 0)
                  == cat).astype(f32)                              # (20, TM)
        scal = (both[0:NS]
                + jnp.dot(w_cat, cat_oh, preferred_element_type=f32)
                + b_res)                                           # (32, TM)
        # l=1 spherical harmonics (normalize=True, 'component') on 3 xyz vectors
        # TODO(synk): assumes e3nn l=1 component order (x, y, z); flip if the
        #             reference o3 convention orders components differently.
        vecs = featT[D_CONT:D_CONT + D_VEC, :]                     # (9, TM)
        sumsq = jnp.dot(blk, vecs * vecs, preferred_element_type=f32)
        sh = SQRT3 * vecs * jax.lax.rsqrt(jnp.maximum(sumsq, 1e-24))
        return scal, sh

    def atom_parts():
        hyb = featT[HYB_COL:HYB_COL + 1, :].astype(jnp.int32)      # (1, TM)
        hyb_oh = (jax.lax.broadcasted_iota(jnp.int32, (HYB_NUM, tm), 0)
                  == hyb).astype(f32)                              # (3, TM)
        return (both[NS:2 * NS]
                + jnp.dot(w_hyb, hyb_oh, preferred_element_type=f32)
                + b_atom)                                          # (32, TM)

    # rows are pre-permuted residue-first: tiles are branch-pure except at the
    # single n_res boundary tile.
    n_res = nres_ref[0]
    start = pl.program_id(0) * tm
    all_res = start + tm <= n_res
    all_atom = start >= n_res

    @pl.when(all_res)
    def _():
        scal, sh = residue_parts()
        outT_ref[0:NS, :] = scal                       # full-lane, unmasked
        outT_ref[NS:OUT_DIM, :] = sh

    @pl.when(all_atom)
    def _():
        outT_ref[0:NS, :] = atom_parts()
        outT_ref[NS:OUT_DIM, :] = jnp.zeros((D_VEC, tm), f32)

    @pl.when(jnp.logical_and(jnp.logical_not(all_res), jnp.logical_not(all_atom)))
    def _():
        scal_r, sh = residue_parts()
        scal_a = atom_parts()
        col = start + jax.lax.broadcasted_iota(jnp.int32, (1, tm), 1)
        is_res = col < n_res                           # (1, TM)
        outT_ref[0:NS, :] = jnp.where(is_res, scal_r, scal_a)
        outT_ref[NS:OUT_DIM, :] = jnp.where(is_res, sh, 0.0)


# ------------------------------ combined wrapper ------------------------------
def _choose_tm(M, cap):
    """Node-tile (lane) size: multiple of 128, >=4 grid steps when possible."""
    if M <= 128:
        return M                                   # single full block (legal)
    cap = max(128, (cap // 128) * 128)
    tm = max(128, (M // (4 * 128)) * 128)          # aim for >=4 grid steps
    return min(cap, tm)


def encode_combined(ft, split_np, consts, tm_cap=8192):
    """ft: (M, 18) f32; split_np: (M,) bool (True = residue row).

    tm_cap=8192 keeps double-buffered I/O + kernel temporaries well under the
    16 MiB v5e scoped-VMEM default; on v6e/v7x 16K-32K also fits (32 MiB limit
    is requested below) if more amortization is wanted.
    """
    split_np = np.asarray(split_np, dtype=bool)
    M = ft.shape[0]
    idx_res = np.nonzero(split_np)[0]
    idx_atom = np.nonzero(~split_np)[0]
    n_res = int(idx_res.shape[0])
    perm = jnp.asarray(np.concatenate([idx_res, idx_atom]).astype(np.int32))

    # Input-side permutation (residue rows first) fused with the feature-major
    # transpose: gathering 18 f32 cols (~72 B/row) is >2x cheaper than the old
    # post-kernel gather of the 41-col output, and the split mask becomes a
    # free in-kernel iota compare against the prefetched n_res scalar.
    featT = jnp.transpose(ft[perm])                # (18, M)

    tm = _choose_tm(M, tm_cap)
    grid = (pl.cdiv(M, tm),)
    nres_arr = jnp.asarray([n_res], dtype=jnp.int32)

    cost = pl.CostEstimate(flops=4200 * M, transcendentals=9 * M,
                           bytes_accessed=(D_TOT + OUT_DIM) * 4 * M + consts.size * 4)

    outT = pl.pallas_call(
        fused_kernel,
        out_shape=jax.ShapeDtypeStruct((OUT_DIM, M), jnp.float32),
        grid_spec=pltpu.PrefetchScalarGridSpec(
            num_scalar_prefetch=1,
            grid=grid,
            in_specs=[
                pl.BlockSpec((D_TOT, tm), lambda i, nres: (0, i)),     # featT
                pl.BlockSpec((2 * NS, CW), lambda i, nres: (0, 0)),    # consts
            ],
            out_specs=pl.BlockSpec((OUT_DIM, tm), lambda i, nres: (0, i)),
        ),
        compiler_params=pltpu.CompilerParams(
            dimension_semantics=("parallel",),
            vmem_limit_bytes=32 * 1024 * 1024),
        cost_estimate=cost,
    )(nres_arr, featT, consts)

    # TODO(synk): if the downstream consumer can take feature-major (41, M)
    #             directly, drop this transpose (pure layout plumbing).
    return jnp.transpose(outT)                     # (M, 41), residue rows first


# --------------------------- parameter init & folding --------------------------
def init_params():
    ks = jax.random.split(jax.random.PRNGKey(42), 9)
    s = 0.1
    return {
        # residue encoder (torch-equivalent, stored (in, out))
        "wc":   (jax.random.normal(ks[0], (D_CONT, NS)) * s).astype(jnp.float32),
        "bc":   (jax.random.normal(ks[1], (1, NS)) * s).astype(jnp.float32),
        "ecat": (jax.random.normal(ks[2], (N_CAT, NS)) * s).astype(jnp.float32),
        "wm":   (jax.random.normal(ks[3], (2 * NS, NS)) * s).astype(jnp.float32),
        "bm":   (jax.random.normal(ks[4], (1, NS)) * s).astype(jnp.float32),
        # atom encoder
        "hemb": (jax.random.normal(ks[5], (HYB_NUM, HYB_DIM)) * s).astype(jnp.float32),
        "bemb": (jax.random.normal(ks[6], (2, BED)) * s).astype(jnp.float32),
        "wa":   (jax.random.normal(ks[7], (ATOM_IN, NS)) * s).astype(jnp.float32),
        "ba":   (jax.random.normal(ks[8], (1, NS)) * s).astype(jnp.float32),
    }


def fold_params(p):
    """Exact algebraic folding into one packed (64, CW) constant (host-side)."""
    f32 = jnp.float32
    wm = p["wm"]
    # residue: scalars = cont @ (wc @ wm[:NS]) + onehot(cat) @ (ecat @ wm[NS:])
    #                    + (bc @ wm[:NS] + bm)
    wc_fold = p["wc"] @ wm[:NS]                               # (8, 32)
    ecat_fold = p["ecat"] @ wm[NS:]                           # (20, 32)
    b_res = p["bc"] @ wm[:NS] + p["bm"]                       # (1, 32)
    w_res = jnp.zeros((D_TOT, NS), f32).at[0:D_CONT, :].set(wc_fold)

    # atom: binary lerp is affine in the 0/1 flag -> fold into an (18, 32) matrix
    wa, ba = p["wa"], p["ba"]
    emb0 = p["bemb"][0:1]                                     # (1, 4)
    dbemb = p["bemb"][1:2] - emb0                             # (1, 4)
    off = NUM_ATOM_TYPE + HYB_DIM                             # 15
    off2 = off + BIN_FEAT * BED                               # 43
    w_atom = jnp.zeros((D_TOT, NS), f32)
    w_atom = w_atom.at[0:NUM_ATOM_TYPE, :].set(wa[0:NUM_ATOM_TYPE])
    w_atom = w_atom.at[10:13, :].set(wa[off2:off2 + SCALAR_FEAT])
    b_atom = ba
    for f, col in enumerate(BIN_COLS):
        w_slice = wa[off + f * BED: off + (f + 1) * BED]      # (4, 32)
        w_atom = w_atom.at[col, :].set((dbemb @ w_slice)[0])
        b_atom = b_atom + emb0 @ w_slice
    hyb_w = p["hemb"] @ wa[NUM_ATOM_TYPE:NUM_ATOM_TYPE + HYB_DIM]  # (3, 32)

    # (9,9) block-diagonal ones: per-vector sum of squares via one tiny matmul
    r = np.arange(D_VEC)[:, None] // 3
    cidx = np.arange(D_VEC)[None, :] // 3
    blk = jnp.asarray((r == cidx).astype(np.float32))

    # pack everything (transposed for feature-major compute) into one constant
    c = jnp.zeros((2 * NS, CW), f32)
    c = c.at[0:NS, 0:D_TOT].set(w_res.T)
    c = c.at[NS:2 * NS, 0:D_TOT].set(w_atom.T)
    c = c.at[0:NS, C_CAT:C_CAT + N_CAT].set(ecat_fold.T)
    c = c.at[0:NS, C_HYB:C_HYB + HYB_NUM].set(hyb_w.T)
    c = c.at[0:NS, C_BR].set(b_res[0])
    c = c.at[0:NS, C_BA].set(b_atom[0])
    c = c.at[0:D_VEC, C_BLK:C_BLK + D_VEC].set(blk)
    return c


# ------------------------- pure-JAX reference (unfolded) -----------------------
def reference(ft, split_np, p):
    split_np = np.asarray(split_np, dtype=bool)
    fr = ft[jnp.asarray(np.nonzero(split_np)[0])]
    fa = ft[jnp.asarray(np.nonzero(~split_np)[0])]

    # residue encoder
    cont_enc = fr[:, :D_CONT] @ p["wc"] + p["bc"]
    cat = fr[:, -1].astype(jnp.int32)
    cat_enc = p["ecat"][cat]
    scal = jnp.concatenate([cont_enc, cat_enc], axis=1) @ p["wm"] + p["bm"]
    vecs = fr[:, D_CONT:D_CONT + D_VEC].reshape(-1, 3, 3)
    nrm = jnp.maximum(jnp.linalg.norm(vecs, axis=-1, keepdims=True), 1e-12)
    sh = (SQRT3 * vecs / nrm).reshape(-1, D_VEC)
    out1 = jnp.concatenate([scal, sh], axis=1)

    # atom encoder
    hyb_emb = p["hemb"][fa[:, HYB_COL].astype(jnp.int32)]
    bflags = fa[:, jnp.asarray(np.array(BIN_COLS))].astype(jnp.int32)
    bemb = p["bemb"][bflags].reshape(fa.shape[0], -1)
    x = jnp.concatenate([fa[:, 0:NUM_ATOM_TYPE], hyb_emb, bemb, fa[:, 10:13]], axis=1)
    out2 = x @ p["wa"] + p["ba"]
    out2 = jnp.pad(out2, ((0, 0), (0, D_VEC)))
    return jnp.concatenate([out1, out2], axis=0)


# ----------------------------------- main --------------------------------------
if __name__ == "__main__":
    M = 384
    key = jax.random.PRNGKey(0)
    k1, k2, k3, k4, k5 = jax.random.split(key, 5)

    # residue-style rows: continuous cols, last col = category index
    ft_res = jax.random.uniform(k1, (M, D_TOT), minval=0.1, maxval=1.0,
                                dtype=jnp.float32)
    cat_col = jax.random.randint(k2, (M,), 0, N_CAT).astype(jnp.float32)
    ft_res = ft_res.at[:, D_TOT - 1].set(cat_col)

    # atom-style rows: binary cols in {0,1}, hyb col in {0..2}, scalars float
    ft_atom = jax.random.uniform(k3, (M, D_TOT), minval=0.0, maxval=1.0,
                                 dtype=jnp.float32)
    hyb_col = jax.random.randint(k4, (M,), 0, HYB_NUM).astype(jnp.float32)
    ft_atom = ft_atom.at[:, HYB_COL].set(hyb_col)
    bin_vals = jax.random.randint(k5, (M, BIN_FEAT), 0, 2).astype(jnp.float32)
    for j, col in enumerate(BIN_COLS):
        ft_atom = ft_atom.at[:, col].set(bin_vals[:, j])

    # deterministic split mask -> n_res = 172 so with tm=128 the 3 grid steps
    # exercise the pure-residue, boundary (mixed) and pure-atom kernel paths.
    split = np.array([(i % 9) < 4 for i in range(M)], dtype=bool)
    ft = jnp.where(jnp.asarray(split)[:, None], ft_res, ft_atom)

    params = init_params()
    consts = fold_params(params)

    out = encode_combined(ft, split, consts, tm_cap=128)   # grid = (3,)
    out = jax.block_until_ready(out)

    assert out.shape == (M, OUT_DIM), out.shape
    assert bool(jnp.all(jnp.isfinite(out)))

    ref = jax.block_until_ready(reference(ft, split, params))
    err = float(jnp.max(jnp.abs(out - ref)))
    assert bool(jnp.allclose(out, ref, atol=2e-2, rtol=2e-2)), err

    print("KERNEL_OK")
</pallas_src>

<mosaic_0001>
module attributes {stable_mosaic.version = 11 : i64} {
  func.func @fused_kernel(%arg0: i32, %arg1: memref<1xi32, #tpu.memory_space<smem>>, %arg2: memref<18x128xf32, #tpu.memory_space<vmem>>, %arg3: memref<64x64xf32, #tpu.memory_space<vmem>>, %arg4: memref<41x128xf32, #tpu.memory_space<vmem>>) attributes {dimension_semantics = [#tpu.dimension_semantics<parallel>], iteration_bounds = array<i64: 3>, scalar_prefetch = 1 : i64, scratch_operands = 0 : i64, tpu.core_type = #tpu.core_type<tc>, window_params = [{transform_indices = @transform_0, window_bounds = array<i64: 18, 128>}, {pipeline_mode = #tpu.pipeline_mode<synchronous>, transform_indices = @transform_1, window_bounds = array<i64: 64, 64>}, {transform_indices = @transform_2, window_bounds = array<i64: 41, 128>}]} {
    %c0 = arith.constant 0 : index
    %c0_0 = arith.constant 0 : index
    %0 = vector.load %arg2[%c0, %c0_0] : memref<18x128xf32, #tpu.memory_space<vmem>>, vector<18x128xf32>
    %c0_1 = arith.constant 0 : index
    %c0_2 = arith.constant 0 : index
    %1 = vector.load %arg3[%c0_1, %c0_2] : memref<64x64xf32, #tpu.memory_space<vmem>>, vector<64x64xf32>
    %2 = vector.extract_strided_slice %1 {offsets = [0, 0], sizes = [64, 18], strides = [1, 1]} : vector<64x64xf32> to vector<64x18xf32>
    %3 = vector.extract_strided_slice %1 {offsets = [0, 18], sizes = [32, 20], strides = [1, 1]} : vector<64x64xf32> to vector<32x20xf32>
    %4 = vector.extract_strided_slice %1 {offsets = [0, 38], sizes = [32, 3], strides = [1, 1]} : vector<64x64xf32> to vector<32x3xf32>
    %5 = vector.extract_strided_slice %1 {offsets = [0, 41], sizes = [32, 1], strides = [1, 1]} : vector<64x64xf32> to vector<32x1xf32>
    %6 = vector.extract_strided_slice %1 {offsets = [0, 42], sizes = [32, 1], strides = [1, 1]} : vector<64x64xf32> to vector<32x1xf32>
    %7 = vector.extract_strided_slice %1 {offsets = [0, 43], sizes = [9, 9], strides = [1, 1]} : vector<64x64xf32> to vector<9x9xf32>
    %cst = arith.constant dense<0.000000e+00> : vector<64x128xf32>
    %8 = tpu.matmul %2, %0, %cst {dimension_numbers = #tpu.dot_dimension_numbers<[1], [0], [0], [1], [0, 0, 1, 1], [], []>} : vector<64x18xf32>, vector<18x128xf32>, vector<64x128xf32> -> vector<64x128xf32>
    %c0_3 = arith.constant 0 : index
    %9 = memref.load %arg1[%c0_3] : memref<1xi32, #tpu.memory_space<smem>>
    %c128_i32 = arith.constant 128 : i32
    %10 = arith.muli %arg0, %c128_i32 : i32
    %c128_i32_4 = arith.constant 128 : i32
    %11 = arith.addi %10, %c128_i32_4 : i32
    %12 = arith.cmpi sle, %11, %9 : i32
    %13 = arith.cmpi sge, %10, %9 : i32
    %14 = arith.extui %12 : i1 to i32
    %c0_i32 = arith.constant 0 : i32
    %15 = arith.cmpi ne, %14, %c0_i32 : i32
    scf.if %15 {
      %23 = vector.extract_strided_slice %0 {offsets = [17, 0], sizes = [1, 128], strides = [1, 1]} : vector<18x128xf32> to vector<1x128xf32>
      %24 = arith.fptosi %23 : vector<1x128xf32> to vector<1x128xi32>
      %25 = tpu.iota {dimensions = array<i32: 0>} : vector<20x128xi32>
      %26 = vector.broadcast %24 : vector<1x128xi32> to vector<20x128xi32>
      %27 = arith.cmpi eq, %25, %26 : vector<20x128xi32>
      %28 = arith.extui %27 : vector<20x128xi1> to vector<20x128xi32>
      %29 = arith.sitofp %28 : vector<20x128xi32> to vector<20x128xf32>
      %30 = vector.extract_strided_slice %8 {offsets = [0, 0], sizes = [32, 128], strides = [1, 1]} : vector<64x128xf32> to vector<32x128xf32>
      %cst_8 = arith.constant dense<0.000000e+00> : vector<32x128xf32>
      %31 = tpu.matmul %3, %29, %cst_8 {dimension_numbers = #tpu.dot_dimension_numbers<[1], [0], [0], [1], [0, 0, 1, 1], [], []>} : vector<32x20xf32>, vector<20x128xf32>, vector<32x128xf32> -> vector<32x128xf32>
      %32 = arith.addf %30, %31 : vector<32x128xf32>
      %33 = vector.broadcast %5 : vector<32x1xf32> to vector<32x128xf32>
      %34 = arith.addf %32, %33 : vector<32x128xf32>
      %35 = vector.extract_strided_slice %0 {offsets = [8, 0], sizes = [9, 128], strides = [1, 1]} : vector<18x128xf32> to vector<9x128xf32>
      %36 = arith.mulf %35, %35 : vector<9x128xf32>
      %cst_9 = arith.constant dense<0.000000e+00> : vector<9x128xf32>
      %37 = tpu.matmul %7, %36, %cst_9 {dimension_numbers = #tpu.dot_dimension_numbers<[1], [0], [0], [1], [0, 0, 1, 1], [], []>} : vector<9x9xf32>, vector<9x128xf32>, vector<9x128xf32> -> vector<9x128xf32>
      %cst_10 = arith.constant 1.73205078 : f32
      %38 = vector.broadcast %cst_10 : f32 to vector<9x128xf32>
      %39 = arith.mulf %38, %35 : vector<9x128xf32>
      %cst_11 = arith.constant 1.000000e-24 : f32
      %40 = vector.broadcast %cst_11 : f32 to vector<9x128xf32>
      %41 = arith.maximumf %37, %40 : vector<9x128xf32>
      %42 = math.rsqrt %41 : vector<9x128xf32>
      %43 = arith.mulf %39, %42 : vector<9x128xf32>
      %c0_12 = arith.constant 0 : index
      %c0_13 = arith.constant 0 : index
      %44 = vector.load %arg4[%c0_12, %c0_13] : memref<41x128xf32, #tpu.memory_space<vmem>>, vector<32x128xf32>
      tpu.vector_store %arg4[%c0_12, %c0_13], %34 {strides = array<i32>} : memref<41x128xf32, #tpu.memory_space<vmem>>, vector<32x128xf32>,
      %c32 = arith.constant 32 : index
      %c0_14 = arith.constant 0 : index
      %45 = vector.load %arg4[%c32, %c0_14] : memref<41x128xf32, #tpu.memory_space<vmem>>, vector<9x128xf32>
      tpu.vector_store %arg4[%c32, %c0_14], %43 {strides = array<i32>} : memref<41x128xf32, #tpu.memory_space<vmem>>, vector<9x128xf32>,
    } else {
    }
    %16 = arith.extui %13 : i1 to i32
    %c0_i32_5 = arith.constant 0 : i32
    %17 = arith.cmpi ne, %16, %c0_i32_5 : i32
    scf.if %17 {
      %23 = vector.extract_strided_slice %0 {offsets = [9, 0], sizes = [1, 128], strides = [1, 1]} : vector<18x128xf32> to vector<1x128xf32>
      %24 = arith.fptosi %23 : vector<1x128xf32> to vector<1x128xi32>
      %25 = tpu.iota {dimensions = array<i32: 0>} : vector<3x128xi32>
      %26 = vector.broadcast %24 : vector<1x128xi32> to vector<3x128xi32>
      %27 = arith.cmpi eq, %25, %26 : vector<3x128xi32>
      %28 = arith.extui %27 : vector<3x128xi1> to vector<3x128xi32>
      %29 = arith.sitofp %28 : vector<3x128xi32> to vector<3x128xf32>
      %30 = vector.extract_strided_slice %8 {offsets = [32, 0], sizes = [32, 128], strides = [1, 1]} : vector<64x128xf32> to vector<32x128xf32>
      %cst_8 = arith.constant dense<0.000000e+00> : vector<32x128xf32>
      %31 = tpu.matmul %4, %29, %cst_8 {dimension_numbers = #tpu.dot_dimension_numbers<[1], [0], [0], [1], [0, 0, 1, 1], [], []>} : vector<32x3xf32>, vector<3x128xf32>, vector<32x128xf32> -> vector<32x128xf32>
      %32 = arith.addf %30, %31 : vector<32x128xf32>
      %33 = vector.broadcast %6 : vector<32x1xf32> to vector<32x128xf32>
      %34 = arith.addf %32, %33 : vector<32x128xf32>
      %c0_9 = arith.constant 0 : index
      %c0_10 = arith.constant 0 : index
      %35 = vector.load %arg4[%c0_9, %c0_10] : memref<41x128xf32, #tpu.memory_space<vmem>>, vector<32x128xf32>
      tpu.vector_store %arg4[%c0_9, %c0_10], %34 {strides = array<i32>} : memref<41x128xf32, #tpu.memory_space<vmem>>, vector<32x128xf32>,
      %cst_11 = arith.constant 0.000000e+00 : f32
      %36 = vector.broadcast %cst_11 : f32 to vector<9x128xf32>
      %c32 = arith.constant 32 : index
      %c0_12 = arith.constant 0 : index
      %37 = vector.load %arg4[%c32, %c0_12] : memref<41x128xf32, #tpu.memory_space<vmem>>, vector<9x128xf32>
      tpu.vector_store %arg4[%c32, %c0_12], %36 {strides = array<i32>} : memref<41x128xf32, #tpu.memory_space<vmem>>, vector<9x128xf32>,
    } else {
    }
    %true = arith.constant true
    %18 = arith.xori %12, %true : i1
    %true_6 = arith.constant true
    %19 = arith.xori %13, %true_6 : i1
    %20 = arith.andi %18, %19 : i1
    %21 = arith.extui %20 : i1 to i32
    %c0_i32_7 = arith.constant 0 : i32
    %22 = arith.cmpi ne, %21, %c0_i32_7 : i32
    scf.if %22 {
      %23 = vector.extract_strided_slice %0 {offsets = [17, 0], sizes = [1, 128], strides = [1, 1]} : vector<18x128xf32> to vector<1x128xf32>
      %24 = arith.fptosi %23 : vector<1x128xf32> to vector<1x128xi32>
      %25 = tpu.iota {dimensions = array<i32: 0>} : vector<20x128xi32>
      %26 = vector.broadcast %24 : vector<1x128xi32> to vector<20x128xi32>
      %27 = arith.cmpi eq, %25, %26 : vector<20x128xi32>
      %28 = arith.extui %27 : vector<20x128xi1> to vector<20x128xi32>
      %29 = arith.sitofp %28 : vector<20x128xi32> to vector<20x128xf32>
      %30 = vector.extract_strided_slice %8 {offsets = [0, 0], sizes = [32, 128], strides = [1, 1]} : vector<64x128xf32> to vector<32x128xf32>
      %cst_8 = arith.constant dense<0.000000e+00> : vector<32x128xf32>
      %31 = tpu.matmul %3, %29, %cst_8 {dimension_numbers = #tpu.dot_dimension_numbers<[1], [0], [0], [1], [0, 0, 1, 1], [], []>} : vector<32x20xf32>, vector<20x128xf32>, vector<32x128xf32> -> vector<32x128xf32>
      %32 = arith.addf %30, %31 : vector<32x128xf32>
      %33 = vector.broadcast %5 : vector<32x1xf32> to vector<32x128xf32>
      %34 = arith.addf %32, %33 : vector<32x128xf32>
      %35 = vector.extract_strided_slice %0 {offsets = [8, 0], sizes = [9, 128], strides = [1, 1]} : vector<18x128xf32> to vector<9x128xf32>
      %36 = arith.mulf %35, %35 : vector<9x128xf32>
      %cst_9 = arith.constant dense<0.000000e+00> : vector<9x128xf32>
      %37 = tpu.matmul %7, %36, %cst_9 {dimension_numbers = #tpu.dot_dimension_numbers<[1], [0], [0], [1], [0, 0, 1, 1], [], []>} : vector<9x9xf32>, vector<9x128xf32>, vector<9x128xf32> -> vector<9x128xf32>
      %cst_10 = arith.constant 1.73205078 : f32
      %38 = vector.broadcast %cst_10 : f32 to vector<9x128xf32>
      %39 = arith.mulf %38, %35 : vector<9x128xf32>
      %cst_11 = arith.constant 1.000000e-24 : f32
      %40 = vector.broadcast %cst_11 : f32 to vector<9x128xf32>
      %41 = arith.maximumf %37, %40 : vector<9x128xf32>
      %42 = math.rsqrt %41 : vector<9x128xf32>
      %43 = arith.mulf %39, %42 : vector<9x128xf32>
      %44 = vector.extract_strided_slice %0 {offsets = [9, 0], sizes = [1, 128], strides = [1, 1]} : vector<18x128xf32> to vector<1x128xf32>
      %45 = arith.fptosi %44 : vector<1x128xf32> to vector<1x128xi32>
      %46 = tpu.iota {dimensions = array<i32: 0>} : vector<3x128xi32>
      %47 = vector.broadcast %45 : vector<1x128xi32> to vector<3x128xi32>
      %48 = arith.cmpi eq, %46, %47 : vector<3x128xi32>
      %49 = arith.extui %48 : vector<3x128xi1> to vector<3x128xi32>
      %50 = arith.sitofp %49 : vector<3x128xi32> to vector<3x128xf32>
      %51 = vector.extract_strided_slice %8 {offsets = [32, 0], sizes = [32, 128], strides = [1, 1]} : vector<64x128xf32> to vector<32x128xf32>
      %cst_12 = arith.constant dense<0.000000e+00> : vector<32x128xf32>
      %52 = tpu.matmul %4, %50, %cst_12 {dimension_numbers = #tpu.dot_dimension_numbers<[1], [0], [0], [1], [0, 0, 1, 1], [], []>} : vector<32x3xf32>, vector<3x128xf32>, vector<32x128xf32> -> vector<32x128xf32>
      %53 = arith.addf %51, %52 : vector<32x128xf32>
      %54 = vector.broadcast %6 : vector<32x1xf32> to vector<32x128xf32>
      %55 = arith.addf %53, %54 : vector<32x128xf32>
      %56 = tpu.iota {dimensions = array<i32: 1>} : vector<1x128xi32>
      %57 = vector.broadcast %10 : i32 to vector<1x128xi32>
      %58 = arith.addi %57, %56 : vector<1x128xi32>
      %59 = vector.broadcast %9 : i32 to vector<1x128xi32>
      %60 = arith.cmpi slt, %58, %59 : vector<1x128xi32>
      %61 = vector.shape_cast %60 : vector<1x128xi1> to vector<1x128xi1>
      %62 = vector.broadcast %61 : vector<1x128xi1> to vector<32x128xi1>
      %63 = arith.select %62, %34, %55 : vector<32x128xi1>, vector<32x128xf32>
      %c0_13 = arith.constant 0 : index
      %c0_14 = arith.constant 0 : index
      %64 = vector.load %arg4[%c0_13, %c0_14] : memref<41x128xf32, #tpu.memory_space<vmem>>, vector<32x128xf32>
      tpu.vector_store %arg4[%c0_13, %c0_14], %63 {strides = array<i32>} : memref<41x128xf32, #tpu.memory_space<vmem>>, vector<32x128xf32>,
      %cst_15 = arith.constant 0.000000e+00 : f32
      %65 = vector.shape_cast %60 : vector<1x128xi1> to vector<1x128xi1>
      %66 = vector.broadcast %65 : vector<1x128xi1> to vector<9x128xi1>
      %67 = vector.broadcast %cst_15 : f32 to vector<9x128xf32>
      %68 = arith.select %66, %43, %67 : vector<9x128xi1>, vector<9x128xf32>
      %c32 = arith.constant 32 : index
      %c0_16 = arith.constant 0 : index
      %69 = vector.load %arg4[%c32, %c0_16] : memref<41x128xf32, #tpu.memory_space<vmem>>, vector<9x128xf32>
      tpu.vector_store %arg4[%c32, %c0_16], %68 {strides = array<i32>} : memref<41x128xf32, #tpu.memory_space<vmem>>, vector<9x128xf32>,
    } else {
    }
    return
  }
  func.func @transform_0(%arg0: i32, %arg1: memref<1xi32, #tpu.memory_space<smem>>) -> (i32, i32) {
    %c0_i32 = arith.constant 0 : i32
    %c0_i32_0 = arith.constant 0 : i32
    return %c0_i32, %arg0 : i32, i32
  }
  func.func @transform_1(%arg0: i32, %arg1: memref<1xi32, #tpu.memory_space<smem>>) -> (i32, i32) {
    %c0_i32 = arith.constant 0 : i32
    %c0_i32_0 = arith.constant 0 : i32
    %c0_i32_1 = arith.constant 0 : i32
    return %c0_i32, %c0_i32_0 : i32, i32
  }
  func.func @transform_2(%arg0: i32, %arg1: memref<1xi32, #tpu.memory_space<smem>>) -> (i32, i32) {
    %c0_i32 = arith.constant 0 : i32
    %c0_i32_0 = arith.constant 0 : i32
    return %c0_i32, %arg0 : i32, i32
  }
}

</mosaic_0001>

<bundles_post_ra>
// kernel: tpu_custom_call.1
= control target key start
LH: loop header
LB: loop body
LE: loop exit
PB: predicated region body
PF: predicated region fallthrough
CT: control target
= control target key end

     0   :  { %s1601_s0 = inlined_call_operand.<no memory space> [shape: s32[1], index: 0, kind: input, shape index: {}]   ;;  %s1602_s1 = inlined_call_operand.hbm [shape: f32[18,384], index: 1, kind: input, shape index: {}]   ;;  %s1603_s2 = inlined_call_operand.hbm [shape: f32[64,64], index: 2, kind: input, shape index: {}]   ;;  %s1604_s3 = inlined_call_operand.hbm [shape: f32[41,384], index: 3, kind: output, shape index: {}]  }
   0x1   :  { %8 = sst [smem:[#allocation3]] %s1601_s0 }
   0x2   :  { %9 = vsyncpa [#allocation5], 0 }
   0x3   :  { %11 = vsyncpa [#allocation5 + $0x1], 0 }
   0x4   :  { %12 = vsyncpa [#allocation8], 0 }
   0x5   :  { %13 = vsyncpa [#allocation6], 0 }
   0x6   :  { %15 = vsyncpa [#allocation6 + $0x1], 0  ;;  %s1256_s14 = smov 0   ;;  %s1258_s15 = smov 0  }
   0x7   :  { %s1260_s16 = smov 0   ;;  %s1262_s17 = smov 0  }
   0x8 LB: > { %s1277_s0 = sadd.s32 4294967295, %s1209_s17   ;;  %s876_s18 = sadd.s32 4294967294, %s1209_s17   ;;  %s1209_s17 = sphi %s1262_s17, %s1616_s17   ;;  %s1205_s16 = sphi %s1260_s16, %s1615_s16   ;;  %s1201_s15 = sphi %s1258_s15, %s1614_s15   ;;  %s1197_s14 = sphi %s1256_s14, %s1613_s14  }
   0x9   : > { %p41_p0 = scmp.ne.s32.totalorder %s1201_s15, %s1197_s14  ;;  %p42_p1 = scmp.eq.s32.totalorder %s1277_s0, 0 }
   0xa   : > { %p86_p2 = scmp.eq.s32.totalorder %s1277_s0, 2  ;;  %p92_p3 = scmp.eq.s32.totalorder %s876_s18, 2 }
   0xb   : > { %p1286_p4 = por %p42_p1, %p41_p0  ;;  %p877_p5 = scmp.ge.s32.totalorder %s1209_s17, 1 }
   0xc   : > { %p1291_p6 = por %p92_p3, %p41_p0  ;;  %p99_p7 = scmp.lt.s32.totalorder %s1209_s17, 4 }
   0xd   : > { %s110_s23 = sshll.u32 %s1603_s2, 4  ;;  %s1211_s25 = smov [#allocation7]   ;;  %s111_s23 = int_to_ptr.hbm [resolvable:$true] %s110_s23 }
   0xe   : > { %p1299_p8 = pnand %p877_p5, %p99_p7  ;;  %s112_s26 = sshll.u32 %s1211_s25, 4  ;;  %s113_s26 = int_to_ptr.vmem [resolvable:$true] %s112_s26 }
   0xf   : > { %s1308_s27 = sadd.s32 1, %s1209_s17   ;;  %s1212_s28 = smov 128  }
  0x10   : > { %p989_p9 = pneg %p1299_p8  ;;  %s1213_s29 = smov 8  }
  0x11   : > { %s25_s30 = ssub.s32 %s1209_s17, %s1308_s27  ;;  %s28_s4 = sadd.s32 1, %s1205_s16 }
  0x12   : > { %p990_p10 = pnand %p989_p9, %p42_p1  ;;  %p26_p11 = scmp.eq.s32.totalorder %s25_s30, 0 }
  0x13   : > { %p35_p12 = scmp.ne.s32.totalorder %s1205_s16, %s1201_s15  ;;  %p36_p13 = scmp.eq.s32.totalorder %s1209_s17, 0 }
  0x14   : > { %992 = dma.hbm_to_vmem [thread:$0]  (!%p990_p10), %s111_s23, 1024, %s113_s26, [#allocation8], %s1212_s28, %s1212_s28, %s1213_s29  }
  0x15   : > { %p1002_p0 = scmp.lt.s32.totalorder %s1209_s17, 3  ;;  %p37_p3 = por %p36_p13, %p35_p12 }
  0x16   : > { %s1321_s5 = scalar_select %p26_p11, %s1205_s16, %s28_s4  }
  0x17   : > { %p1325_p5 = por %p86_p2, %p35_p12  ;;  %s126_s7 = sand.u32 1, %s1205_s16  }
  0x18   : > { %s880_s8 = sshll.u32 %s1209_s17, 3  ;;  %s958_s9 = smul.u32 24, %s126_s7 }
  0x19   : > { %s134_s12 = scalar_lea.hbm %s1602_s1, %s880_s8  ;;  %p1334_p7 = pnand %p1002_p0, %p37_p3 }
  0x1a   : > { %s135_s18 = sshll.u32 %s134_s12, 4  ;;  %s130_s21 = scalar_lea.vmem [#allocation4], %s958_s9  ;;  %s136_s18 = int_to_ptr.hbm [resolvable:$true] %s135_s18 }
  0x1b   : > { %s137_s22 = sshll.u32 %s130_s21, 4  ;;  %s127_s23 = scalar_lea.sflag [#allocation5], %s126_s7  ;;  %s138_s22 = int_to_ptr.vmem [resolvable:$true] %s137_s22 }
  0x1c   : > { %s1109_s25 = sshra.s32 %s136_s18, 4  ;;  %p1113_p9 = pneg %p1334_p7  ;;  %s1110_s25 = int_to_ptr.hbm [resolvable:$true] %s1109_s25 }
  0x1d   : > { %s1111_s26 = scalar_lea.hbm %s1110_s25, 24  ;;  %s1116_s8 = scalar_lea.hbm %s1602_s1, 72 }
  0x1e   : > { %p1112_p2 = scmp.ne.s32.totalorder %s1110_s25, %s1111_s26  ;;  %p1117_p12 = scmp.lt.s32.totalorder %s1110_s25, %s1602_s1 }
  0x1f   : > { %p1118_p13 = scmp.lt.s32.totalorder %s1116_s8, %s1111_s26 }
  0x20   : > { %p1114_p10 = pnand %p1113_p9, %p1112_p2 }
  0x21   : > { %p1119_p0 = por %p1118_p13, %p1117_p12 }
  0x22   : > { %p1115_p11 = pneg %p1114_p10 }
  0x24   : > { %p1120_p3 = pnand %p1119_p0, %p1115_p11 }
  0x26   : > { %1123 = shalt.err (!%p1120_p3)
}
  0x27   : > { %s1214_s7 = smov 384   ;;  %149 = sbr.rel (%p1299_p8) target bundleno = 1035 (0x40b), region = 28 }
  0x28   : > { %996 = dma.hbm_to_vmem [thread:$0]  (!%p1334_p7), %s136_s18, 384, %s138_s22, %s127_s23, %s1214_s7, %s1212_s28, %s1213_s29  }
  0x29   : > { %s1353_s9 = sand.u32 (!%p1299_p8), 1, %s1201_s15  }
  0x2a   : > { %s959_s12 = smul.u32 (!%p1299_p8), 24, %s1353_s9  ;;  %s152_s21 = scalar_lea.sflag (!%p1299_p8), [#allocation5], %s1353_s9 }
  0x2c   : > { %s155_s25 = scalar_lea.vmem [#allocation4], %s959_s12 }
  0x2d   : > { %1184 = dma.done.wait (%p1286_p4), %s152_s21, 384  }
  0x2e   : > { %1186 = vsyncadd (%p1286_p4), %s152_s21, 4294966912 }
  0x2f   : > { %1188 = dma.done.wait (%p42_p1), [#allocation8], 1024  }
  0x30   : > { %1190 = vsyncadd (%p42_p1), [#allocation8], 4294966272  ;;  %s960_s24 = smul.u32 48, %s1353_s9  ;;  %s1366_s28 = sld [smem:[#allocation3]]  ;;  %vm218_vm0 = vcmask 1041408   ;;  %v1370_v1 = vld [vmem:[%s155_s25 + $0x8] sm:$0xff] }
  0x31   : > { %v1368_v0 = vld [vmem:[%s155_s25 + $0x10] sm:$0x3]  ;;  %v182_v2 = vld [vmem:[%s155_s25] sm:$0xff]  ;;  %vm193_vm1 = vcmask 146432   ;;  %s1401_s19 = sshll.u32 %s1277_s0, 7 }
  0x32   : > { %937 = vmatpush.msk.msra.mxu2 %vm218_vm0, %v1368_v0  ;;  %938 = vmatpush.msk.msra.mxu3 %vm218_vm0, %v1368_v0  ;;  %v189_v3 = vld [vmem:[#allocation7 + $0x20] sm:$0xff]  ;;  %v191_v4 = vld [vmem:[#allocation7 + $0x30] sm:$0xff]  ;;  %v190_v7 = vld [vmem:[#allocation7 + $0x28] sm:$0xff]  ;;  %s265_s29 = sadd.s32 128, %s1401_s19  ;;  %s1422_s13 = scalar_lea.vmem [#allocation9], %s960_s24 }
  0x33   : > { %883 = vmatpush.msk.msra.mxu0 %vm218_vm0, %v1368_v0  ;;  %936 = vmatpush.msk.msra.mxu1 %vm218_vm0, %v1368_v0  ;;  %v1380_v5 = vld [vmem:[#allocation7] sm:$0xff]  ;;  %v1382_v6 = vld [vmem:[#allocation7 + $0x10] sm:$0xff]  ;;  %v192_v8 = vld [vmem:[#allocation7 + $0x38] sm:$0xff] }
  0x34   : > { %940 = vmatpush.msra.mxu2 %v1370_v1  ;;  %941 = vmatpush.msra.mxu3 %v1370_v1  ;;  %v1390_v9 = vld [vmem:[#allocation7 + $0x8] sm:$0xff]  ;;  %v1392_v10 = vld [vmem:[#allocation7 + $0x18] sm:$0xff] }
  0x35   : > { %236 = vmatpush.msra.mxu0 %v1370_v1  ;;  %939 = vmatpush.msra.mxu1 %v1370_v1 }
  0x36   : > { %943 = vmatpush.msra.mxu2 %v182_v2  ;;  %944 = vmatpush.msra.mxu3 %v182_v2  ;;  %p1425_p1 = scmp.gt.s32.totalorder %s265_s29, %s1366_s28 }
  0x37   : > { %888 = vmatmul.msk.f32.vlgmr.msra.gmra.mxu2 %vm193_vm1, %v189_v3  ;;  %890 = vmatmul.msk.f32.vlgmr.msra.gmra.mxu3 %vm193_vm1, %v191_v4  ;;  %s1215_s22 = smov (!%p1425_p1), 85   ;;  %s1216_s23 = smov (!%p1425_p1), 110  }
  0x38   : > { %237 = vmatpush.msra.mxu0 %v182_v2  ;;  %942 = vmatpush.msra.mxu1 %v182_v2 }
  0x39   : > { %884 = vmatmul.msk.f32.vlgmr.msra.gmra.mxu0 %vm193_vm1, %v1380_v5  ;;  %886 = vmatmul.msk.f32.vlgmr.msra.gmra.mxu1 %vm193_vm1, %v1382_v6 }
  0x3f   : > { %889 = vmatmul.msk.f32.gmra.mxu2 %vm193_vm1, %v190_v7  ;;  %891 = vmatmul.msk.f32.gmra.mxu3 %vm193_vm1, %v192_v8 }
  0x41   : > { %885 = vmatmul.msk.f32.gmra.mxu0 %vm193_vm1, %v1390_v9  ;;  %887 = vmatmul.msk.f32.gmra.mxu1 %vm193_vm1, %v1392_v10 }
  0xb6   : > { %v1404_v11 = vpop.f32.mrf.mxu0  ;;  %v1406_v12 = vpop.f32.mrf.mxu1 }
  0xba   : > { %v1408_v13 = vpop.f32.mrf.mxu2  ;;  %v1410_v14 = vpop.f32.mrf.mxu3 }
  0xbe   : > { %v1412_v15 = vpop.f32.mrf.mxu0  ;;  %v1414_v16 = vpop.f32.mrf.mxu1  ;;  %270 = sbr.rel (%p1425_p1) target bundleno = 467 (0x1d3), region = 40 }
  0xc2   : > { %v1416_v17 = vpop.f32.mrf.mxu2  ;;  %v1418_v18 = vpop.f32.mrf.mxu3 }
  0xc3   : > { %v361_v19 = vmul.f32 %v1368_v0, %v1368_v0  ;;  %vm371_vm2 = vcmask 1040384   ;;  %362 = vrot.lane.b32.xlu0 %v1380_v5, %s1215_s22  ;;  %288 = vrot.lane.b32.xlu1 %v1390_v9, %s1216_s23  ;;  %v360_v20 = vmul.f32 %v1370_v1, %v1370_v1  ;;  %v962_v21 = vceil.f32 %v1368_v0 }
  0xc4   : > { %292 = vrot.lane.b32.xlu2 %v1392_v10, %s1216_s23  ;;  %v963_v22 = vfloor.f32 %v1368_v0  ;;  %vm961_vm3 = vcmp.lt.s32.totalorder %v1368_v0, 0  ;;  %v272_v23 = vlaneseq  ;;  %v1217_v29 = vmov 0.0  }
  0xc5   : > { %904 = vmatpush.msk.msra.mxu1 %vm371_vm2, %v361_v19  ;;  %vm303_vm5 = vcmask 1043456   ;;  %v1218_v33 = vmov 1.0   ;;  %vm294_vm8 = vcmask 162816   ;;  %v1219_v34 = vmov 41  }
  0xc6   : > { %v964_v24 = vsel %vm961_vm3, %v962_v21, %v963_v22  ;;  %v273_v26 = vshrl.u32 %v272_v23, 7  ;;  %1060 = vset.pattern.permute.xlu1 %v1219_v34  ;;  %1059 = vset.pattern.permute.xlu0 %v1219_v34  ;;  %vm366_vm9 = vcmask 72704   ;;  %v398_v3 = vmul.f32 1.7320508, %v1370_v1 }
  0xc7   : > { %390 = vmatpush.msra.mxu1 %v360_v20  ;;  %v965_v25 = vcvt.f32.s32 %v964_v24  ;;  %1061 = vset.pattern.permute.xlu2 %v1219_v34  ;;  %v399_v24 = vmul.f32 1.7320508, %v1368_v0 }
  0xc8   : > { %v275_v27 = vadd.s32 16, %v273_v26  ;;  %v274_v31 = vadd.s32 8, %v273_v26 }
  0xc9   : > { %v276_v28 = vperm.slane %v965_v25, 1 }
  0xcb   : > { %364 = vrot.lane.b32.xlu0 %v1390_v9, %s1215_s22  ;;  %290 = vrot.lane.b32.xlu1 %v1382_v6, %s1216_s23  ;;  %vm279_vm4 = vcmp.eq.s32.totalorder %v275_v27, %v276_v28  ;;  %vm278_vm6 = vcmp.eq.s32.totalorder %v274_v31, %v276_v28  ;;  %vm277_vm7 = vcmp.eq.s32.totalorder %v273_v26, %v276_v28 }
  0xcc   : > { %286 = vrot.lane.b32.xlu2 %v1380_v5, %s1216_s23  ;;  %v896_v30 = vsel %vm279_vm4, 1.0, %v1217_v29 }
  0xcd   : > { %945 = vmatpush.msk.msra.mxu2 %vm303_vm5, %v896_v30  ;;  %946 = vmatpush.msk.msra.mxu3 %vm303_vm5, %v896_v30 }
  0xce   : > { %897 = vmatpush.msk.msra.mxu0 %vm303_vm5, %v896_v30 }
  0xcf   : > { %947 = vmatpush.msk.msra.mxu2 %vm278_vm6, %v1218_v33  ;;  %948 = vmatpush.msk.msra.mxu3 %vm278_vm6, %v1218_v33 }
  0xd0   : > { %898 = vmatpush.msk.msra.mxu0 %vm278_vm6, %v1218_v33 }
  0xd1   : > { %949 = vmatpush.msk.msra.mxu2 %vm277_vm7, %v1218_v33  ;;  %950 = vmatpush.msk.msra.mxu3 %vm277_vm7, %v1218_v33 }
  0xd2   : > { %899 = vmatpush.msk.msra.mxu0 %vm277_vm7, %v1218_v33 }
  0xd3   : > { %345 = vperm.xlu1 %1060, %v1390_v9   ;;  %341 = vperm.xlu0 %1059, %v1380_v5  }
  0xd4   : > { %349 = vperm.xlu2 %1061, %v1382_v6  }
  0xdb   : > { %353 = vperm.xlu1 %1060, %v1392_v10  }
 0x11e   : > { %v293_v32 = vpop.permute.xlu2 %292 }
 0x11f   : > { %903 = vmatmul.msk.f32.vlgmr.msra.gmra.mxu3 %vm294_vm8, %v293_v32 }
 0x126   : > { %v287_v35 = vpop.permute.xlu2 %286 }
 0x127   : > { %900 = vmatmul.msk.f32.vlgmr.msra.gmra.mxu0 %vm294_vm8, %v287_v35 }
 0x12e   : > { %v350_v61 = vpop.permute.xlu2 %349 }
 0x135   : > { %v363_v36 = vpop.permute.xlu0 %362  ;;  %v289_v37 = vpop.permute.xlu1 %288 }
 0x136   : > { %905 = vmatmul.msk.f32.vlgmr.msra.gmra.mxu1 %vm366_vm9, %v363_v36  ;;  %901 = vmatmul.msk.f32.vlgmr.msra.gmra.mxu2 %vm294_vm8, %v289_v37 }
 0x13d   : > { %v365_v38 = vpop.permute.xlu0 %364  ;;  %v291_v39 = vpop.permute.xlu1 %290 }
 0x13e   : > { %906 = vmatmul.msk.f32.gmra.mxu1 %vm366_vm9, %v365_v38  ;;  %902 = vmatmul.msk.f32.gmra.mxu2 %vm294_vm8, %v291_v39 }
 0x145   : > { %v346_v40 = vpop.permute.xlu1 %345  ;;  %v342_v47 = vpop.permute.xlu0 %341 }
 0x14d   : > { %v354_v43 = vpop.permute.xlu1 %353 }
 0x1a2   : > { %v333_v41 = vpop.f32.mrf.mxu3 }
 0x1a3   : > { %v339_v42 = vadd.f32 %v333_v41, %v1414_v16 }
 0x1a4   : > { %v324_v45 = vpop.f32.mrf.mxu0 }
 0x1a5   : > { %v359_v44 = vadd.f32 %v354_v43, %v339_v42  ;;  %v336_v46 = vadd.f32 %v324_v45, %v1404_v11 }
 0x1a7   : > { %427 = vst [vmem:[%s1422_s13 + $0x18] sm:$0xff] %v359_v44  ;;  %v356_v48 = vadd.f32 %v342_v47, %v336_v46 }
 0x1a9   : > { %424 = vst [vmem:[%s1422_s13] sm:$0xff] %v356_v48 }
 0x1b3   : > { %v392_v49 = vpop.f32.mrf.mxu1 }
 0x1b4   : > { %v400_v50 = vmax.f32 %v392_v49, 1e-24 }
 0x1b6   : > { %1062 = vrsqrt.f32 %v400_v50  ;;  %vm408_vm11 = vweird.f32 %v400_v50 }
 0x1b9   : > { %v327_v51 = vpop.f32.mrf.mxu2 }
 0x1ba   : > { %v337_v52 = vadd.f32 %v327_v51, %v1412_v15 }
 0x1bb   : > { %v395_v53 = vpop.f32.mrf.mxu1 }
 0x1bc   : > { %v1063_v54 = vpop.eup %1062  ;;  %v401_v55 = vmax.f32 %v395_v53, 1e-24  ;;  %v357_v56 = vadd.f32 %v346_v40, %v337_v52 }
 0x1bd   : > { %v403_v57 = vmul.f32 %v1063_v54, %v400_v50  ;;  %vm409_vm10 = vweird.f32 %v1063_v54 }
 0x1be   : > { %1064 = vrsqrt.f32 %v401_v55  ;;  %425 = vst [vmem:[%s1422_s13 + $0x8] sm:$0xff] %v357_v56  ;;  %vm410_vm12 = vmor %vm408_vm11, %vm409_vm10  ;;  %vm418_vm14 = vweird.f32 %v401_v55 }
 0x1bf   : > { %v404_v58 = vmul.f32 %v1063_v54, %v403_v57 }
 0x1c1   : > { %v405_v59 = vmul.f32 0.5, %v404_v58  ;;  %v330_v60 = vpop.f32.mrf.mxu2 }
 0x1c2   : > { %v338_v62 = vadd.f32 %v330_v60, %v1406_v12 }
 0x1c3   : > { %v406_v63 = vsub.f32 1.5, %v405_v59 }
 0x1c4   : > { %v1065_v2 = vpop.eup %1064  ;;  %v358_v4 = vadd.f32 %v350_v61, %v338_v62 }
 0x1c5   : > { %v407_v7 = vmul.f32 %v1063_v54, %v406_v63  ;;  %v413_v8 = vmul.f32 %v1065_v2, %v401_v55  ;;  %vm419_vm13 = vweird.f32 %v1065_v2 }
 0x1c6   : > { %426 = vst [vmem:[%s1422_s13 + $0x10] sm:$0xff] %v358_v4  ;;  %vm420_vm15 = vmor %vm418_vm14, %vm419_vm13 }
 0x1c7   : > { %v411_v19 = vsel %vm410_vm12, %v1063_v54, %v407_v7  ;;  %v414_v20 = vmul.f32 %v1065_v2, %v413_v8 }
 0x1c8   : > { %v422_v21 = vmul.f32 %v411_v19, %v398_v3 }
 0x1c9   : > { %v415_v22 = vmul.f32 0.5, %v414_v20 }
 0x1ca   : > { %428 = vst [vmem:[%s1422_s13 + $0x20] sm:$0xff] %v422_v21 }
 0x1cb   : > { %v416_v23 = vsub.f32 1.5, %v415_v22 }
 0x1cd   : > { %v417_v25 = vmul.f32 %v1065_v2, %v416_v23 }
 0x1cf   : > { %v421_v26 = vsel %vm420_vm15, %v1065_v2, %v417_v25 }
 0x1d0   : > { %v423_v27 = vmul.f32 %v421_v26, %v399_v24 }
 0x1d2   : > { %429 = vst [vmem:[%s1422_s13 + $0x28] sm:$0x1] %v423_v27 }
 0x1d3 PF: > { %p907_p4 = scmp.lt.s32.totalorder %s1401_s19, %s1366_s28 }
 0x1d4   : > { %s1220_s26 = smov (!%p907_p4), 90  }
 0x1d5   : > { %432 = sbr.rel (%p907_p4) target bundleno = 734 (0x2de), region = 44 }
 0x1da   : > { %440 = vrot.lane.b32.xlu1 %v1380_v5, %s1220_s26  ;;  %444 = vrot.lane.b32.xlu0 %v1382_v6, %s1220_s26  ;;  %v967_v28 = vceil.f32 %v1370_v1  ;;  %v968_v29 = vfloor.f32 %v1370_v1  ;;  %vm966_vm0 = vcmp.lt.s32.totalorder %v1370_v1, 0  ;;  %v434_v32 = vlaneseq }
 0x1db   : > { %v1221_v35 = vmov 0.0   ;;  %vm457_vm2 = vcmask 1042432   ;;  %v1222_v37 = vmov 42   ;;  %vm448_vm3 = vcmask 23552  }
 0x1dc   : > { %v969_v30 = vsel %vm966_vm0, %v967_v28, %v968_v29  ;;  %v435_v33 = vshrl.u32 %v434_v32, 7  ;;  %518 = vst [vmem:[%s1422_s13 + $0x20] sm:$0xff] %v1221_v35  ;;  %1067 = vset.pattern.permute.xlu0 %v1222_v37  ;;  %1068 = vset.pattern.permute.xlu1 %v1222_v37 }
 0x1dd   : > { %v970_v31 = vcvt.f32.s32 %v969_v30  ;;  %519 = vst [vmem:[%s1422_s13 + $0x28] sm:$0x1] %v1221_v35  ;;  %1066 = vset.pattern.permute.xlu2 %v1222_v37 }
 0x1de   : > { %495 = vperm.xlu2 %1066, %v1380_v5  }
 0x1df   : > { %v436_v34 = vperm.slane %v970_v31, 1 }
 0x1e1   : > { %vm437_vm1 = vcmp.eq.s32.totalorder %v435_v33, %v436_v34 }
 0x1e2   : > { %442 = vrot.lane.b32.xlu1 %v1390_v9, %s1220_s26  ;;  %446 = vrot.lane.b32.xlu0 %v1392_v10, %s1220_s26  ;;  %v908_v36 = vsel %vm437_vm1, 1.0, %v1221_v35 }
 0x1e3   : > { %952 = vmatpush.msk.msra.mxu2 %vm457_vm2, %v908_v36  ;;  %909 = vmatpush.msk.msra.mxu0 %vm457_vm2, %v908_v36 }
 0x1e4   : > { %951 = vmatpush.msk.msra.mxu1 %vm457_vm2, %v908_v36  ;;  %953 = vmatpush.msk.msra.mxu3 %vm457_vm2, %v908_v36 }
 0x1e6   : > { %499 = vperm.xlu2 %1066, %v1390_v9  }
 0x1ea   : > { %503 = vperm.xlu0 %1067, %v1382_v6   ;;  %507 = vperm.xlu1 %1068, %v1392_v10  }
 0x238   : > { %v496_v42 = vpop.permute.xlu2 %495 }
 0x240   : > { %v500_v52 = vpop.permute.xlu2 %499 }
 0x24c   : > { %v441_v38 = vpop.permute.xlu1 %440  ;;  %v445_v39 = vpop.permute.xlu0 %444 }
 0x24d   : > { %912 = vmatmul.msk.f32.vlgmr.msra.gmra.mxu2 %vm448_vm3, %v445_v39  ;;  %910 = vmatmul.msk.f32.vlgmr.msra.gmra.mxu0 %vm448_vm3, %v441_v38 }
 0x254   : > { %v443_v40 = vpop.permute.xlu1 %442  ;;  %v447_v41 = vpop.permute.xlu0 %446 }
 0x255   : > { %911 = vmatmul.msk.f32.vlgmr.msra.gmra.mxu1 %vm448_vm3, %v443_v40  ;;  %913 = vmatmul.msk.f32.vlgmr.msra.gmra.mxu3 %vm448_vm3, %v447_v41 }
 0x25c   : > { %v504_v47 = vpop.permute.xlu0 %503  ;;  %v508_v55 = vpop.permute.xlu1 %507 }
 0x2ca   : > { %v478_v43 = vpop.f32.mrf.mxu0 }
 0x2cb   : > { %v490_v44 = vadd.f32 %v478_v43, %v1408_v13 }
 0x2cd   : > { %v510_v45 = vadd.f32 %v496_v42, %v490_v44 }
 0x2cf   : > { %514 = vst [vmem:[%s1422_s13] sm:$0xff] %v510_v45 }
 0x2d0   : > { %v484_v46 = vpop.f32.mrf.mxu2 }
 0x2d1   : > { %v492_v48 = vadd.f32 %v484_v46, %v1410_v14 }
 0x2d2   : > { %v481_v49 = vpop.f32.mrf.mxu1 }
 0x2d3   : > { %v512_v50 = vadd.f32 %v504_v47, %v492_v48  ;;  %v491_v51 = vadd.f32 %v481_v49, %v1416_v17 }
 0x2d5   : > { %516 = vst [vmem:[%s1422_s13 + $0x10] sm:$0xff] %v512_v50  ;;  %v511_v53 = vadd.f32 %v500_v52, %v491_v51 }
 0x2d7   : > { %515 = vst [vmem:[%s1422_s13 + $0x8] sm:$0xff] %v511_v53 }
 0x2d8   : > { %v487_v54 = vpop.f32.mrf.mxu3 }
 0x2d9   : > { %v493_v56 = vadd.f32 %v487_v54, %v1418_v18 }
 0x2db   : > { %v513_v57 = vadd.f32 %v508_v55, %v493_v56 }
 0x2dd   : > { %517 = vst [vmem:[%s1422_s13 + $0x18] sm:$0xff] %v513_v57 }
 0x2de PF: > { %p522_p8 = pnand %p907_p4, %p1425_p1 }
 0x2df   : > { %s1223_s30 = smov (!%p522_p8), 90   ;;  %s1224_s4 = smov (!%p522_p8), 85  }
 0x2e0   : > { %525 = sbr.rel (%p522_p8) target bundleno = 1018 (0x3fa), region = 48  ;;  %s1225_s8 = smov (!%p522_p8), 110  }
 0x2e5   : > { %v616_v58 = vmul.f32 %v1368_v0, %v1368_v0  ;;  %vm626_vm4 = vcmask 1040384   ;;  %686 = vrot.lane.b32.xlu1 %v1390_v9, %s1223_s30  ;;  %617 = vrot.lane.b32.xlu0 %v1380_v5, %s1224_s4  ;;  %v972_v59 = vceil.f32 %v1368_v0  ;;  %v973_v60 = vfloor.f32 %v1368_v0 }
 0x2e6   : > { %545 = vrot.lane.b32.xlu2 %v1382_v6, %s1225_s8  ;;  %v977_v61 = vceil.f32 %v1370_v1  ;;  %v978_v62 = vfloor.f32 %v1370_v1  ;;  %vm971_vm5 = vcmp.lt.s32.totalorder %v1368_v0, 0  ;;  %v527_v63 = vlaneseq }
 0x2e7   : > { %924 = vmatpush.msk.msra.mxu1 %vm626_vm4, %v616_v58  ;;  %vm976_vm6 = vcmp.lt.s32.totalorder %v1370_v1, 0  ;;  %v974_v2 = vsel %vm971_vm5, %v972_v59, %v973_v60  ;;  %v615_v4 = vmul.f32 %v1370_v1, %v1370_v1  ;;  %vm558_vm7 = vcmask 1043456  }
 0x2e8   : > { %v979_v3 = vsel %vm976_vm6, %v977_v61, %v978_v62  ;;  %v975_v7 = vcvt.f32.s32 %v974_v2  ;;  %v528_v8 = vshrl.u32 %v527_v63, 7  ;;  %vm701_vm10 = vcmask 1042432  }
 0x2e9   : > { %v980_v19 = vcvt.f32.s32 %v979_v3  ;;  %645 = vmatpush.msra.mxu1 %v615_v4  ;;  %v1226_v23 = vmov 0.0   ;;  %v1227_v27 = vmov 41   ;;  %v1228_v28 = vmov 1.0  }
 0x2ea   : > { %v530_v20 = vadd.s32 16, %v528_v8  ;;  %v531_v21 = vperm.slane %v975_v7, 1  ;;  %v529_v26 = vadd.s32 8, %v528_v8  ;;  %1069 = vset.pattern.permute.xlu1 %v1227_v27  ;;  %1071 = vset.pattern.permute.xlu0 %v1227_v27  ;;  %v1229_v29 = vmov 42  }
 0x2eb   : > { %v680_v22 = vperm.slane %v980_v19, 1  ;;  %1070 = vset.pattern.permute.xlu2 %v1227_v27  ;;  %vm621_vm13 = vcmask 72704   ;;  %vm692_vm14 = vcmask 23552   ;;  %vm549_vm15 = vcmask 162816  }
 0x2ec   : > { %vm534_vm8 = vcmp.eq.s32.totalorder %v530_v20, %v531_v21  ;;  %vm533_vm11 = vcmp.eq.s32.totalorder %v529_v26, %v531_v21  ;;  %vm532_vm12 = vcmp.eq.s32.totalorder %v528_v8, %v531_v21  ;;  %v759_v42 = vand.u32 127, %v527_v63 }
 0x2ed   : > { %619 = vrot.lane.b32.xlu1 %v1390_v9, %s1224_s4  ;;  %543 = vrot.lane.b32.xlu0 %v1390_v9, %s1225_s8  ;;  %vm681_vm9 = vcmp.eq.s32.totalorder %v528_v8, %v680_v22  ;;  %v916_v24 = vsel %vm534_vm8, 1.0, %v1226_v23  ;;  %v760_v45 = vstv %s1401_s19  ;;  %v762_v51 = vstv %s1366_s28 }
 0x2ee   : > { %688 = vrot.lane.b32.xlu2 %v1382_v6, %s1223_s30  ;;  %v927_v25 = vsel %vm681_vm9, 1.0, %v1226_v23  ;;  %954 = vmatpush.msk.msra.mxu3 %vm558_vm7, %v916_v24  ;;  %v761_v49 = vadd.s32 %v760_v45, %v759_v42  ;;  %v653_v62 = vmul.f32 1.7320508, %v1370_v1 }
 0x2ef   : > { %957 = vmatpush.msk.msra.mxu2 %vm701_vm10, %v927_v25  ;;  %917 = vmatpush.msk.msra.mxu0 %vm558_vm7, %v916_v24 }
 0x2f0   : > { %955 = vmatpush.msk.msra.mxu3 %vm533_vm11, %v1228_v28  ;;  %vm1537_vm0 = vcmp.lt.s32.totalorder %v761_v49, %v762_v51 }
 0x2f1   : > { %918 = vmatpush.msk.msra.mxu0 %vm533_vm11, %v1228_v28 }
 0x2f2   : > { %956 = vmatpush.msk.msra.mxu3 %vm532_vm12, %v1228_v28 }
 0x2f3   : > { %919 = vmatpush.msk.msra.mxu0 %vm532_vm12, %v1228_v28 }
 0x2f5   : > { %541 = vrot.lane.b32.xlu0 %v1380_v5, %s1225_s8  ;;  %547 = vrot.lane.b32.xlu1 %v1392_v10, %s1225_s8 }
 0x2f6   : > { %690 = vrot.lane.b32.xlu2 %v1392_v10, %s1223_s30  ;;  %928 = vmatpush.msk.msrb.mxu0 %vm701_vm10, %v927_v25 }
 0x2fd   : > { %684 = vrot.lane.b32.xlu0 %v1380_v5, %s1223_s30  ;;  %596 = vperm.xlu1 %1069, %v1380_v5  }
 0x2fe   : > { %600 = vperm.xlu2 %1070, %v1390_v9  }
 0x305   : > { %604 = vperm.xlu0 %1071, %v1382_v6   ;;  %608 = vperm.xlu1 %1069, %v1392_v10  }
 0x306   : > { %1072 = vset.pattern.permute.xlu2 %v1229_v29 }
 0x307   : > { %739 = vperm.xlu2 %1072, %v1380_v5  }
 0x30d   : > { %1074 = vset.pattern.permute.xlu0 %v1229_v29  ;;  %1073 = vset.pattern.permute.xlu1 %v1229_v29  ;;  %v654_v29 = vmul.f32 1.7320508, %v1368_v0 }
 0x30e   : > { %751 = vperm.xlu0 %1074, %v1392_v10   ;;  %743 = vperm.xlu1 %1073, %v1390_v9  }
 0x30f   : > { %747 = vperm.xlu2 %1072, %v1382_v6  }
 0x340   : > { %v546_v30 = vpop.permute.xlu2 %545 }
 0x348   : > { %v689_v33 = vpop.permute.xlu2 %688 }
 0x350   : > { %v691_v5 = vpop.permute.xlu2 %690 }
 0x357   : > { %v687_v31 = vpop.permute.xlu1 %686  ;;  %v618_v32 = vpop.permute.xlu0 %617 }
 0x358   : > { %925 = vmatmul.msk.f32.vlgmr.msra.gmra.mxu1 %vm621_vm13, %v618_v32  ;;  %930 = vmatmul.msk.f32.vlgmr.msra.gmra.mxu2 %vm692_vm14, %v687_v31  ;;  %v601_v38 = vpop.permute.xlu2 %600 }
 0x35f   : > { %v620_v34 = vpop.permute.xlu1 %619  ;;  %v544_v35 = vpop.permute.xlu0 %543 }
 0x360   : > { %921 = vmatmul.msk.f32.vlgmr.msra.gmra.mxu3 %vm549_vm15, %v544_v35  ;;  %926 = vmatmul.msk.f32.gmra.mxu1 %vm621_vm13, %v620_v34 }
 0x361   : > { %931 = vmatmul.msk.f32.gmra.mxu2 %vm692_vm14, %v689_v33  ;;  %v740_v48 = vpop.permute.xlu2 %739 }
 0x367   : > { %v542_v9 = vpop.permute.xlu0 %541  ;;  %v548_v6 = vpop.permute.xlu1 %547 }
 0x368   : > { %920 = vmatmul.msk.f32.vlgmr.msra.gmra.mxu0 %vm549_vm15, %v542_v9  ;;  %922 = vmatmul.msk.f32.gmra.mxu3 %vm549_vm15, %v546_v30 }
 0x369   : > { %932 = vmatmul.msk.f32.gmra.mxu2 %vm692_vm14, %v691_v5  ;;  %v748_v20 = vpop.permute.xlu2 %747 }
 0x36f   : > { %v685_v10 = vpop.permute.xlu0 %684  ;;  %v597_v36 = vpop.permute.xlu1 %596 }
 0x370   : > { %923 = vmatmul.msk.f32.gmra.mxu3 %vm549_vm15, %v548_v6  ;;  %929 = vmatmul.msk.f32.vlgmr.msrb.gmra.mxu0 %vm692_vm14, %v685_v10 }
 0x377   : > { %v1530_v40 = vpop.permute.xlu1 %608  ;;  %v605_v4 = vpop.permute.xlu0 %604 }
 0x380   : > { %v744_v54 = vpop.permute.xlu1 %743  ;;  %v752_v5 = vpop.permute.xlu0 %751 }
 0x3d5   : > { %v647_v37 = vpop.f32.mrf.mxu1 }
 0x3d6   : > { %v655_v39 = vmax.f32 %v647_v37, 1e-24 }
 0x3d8   : > { %1075 = vrsqrt.f32 %v655_v39  ;;  %vm663_vm2 = vweird.f32 %v655_v39 }
 0x3db   : > { %v725_v41 = vpop.f32.mrf.mxu2 }
 0x3dc   : > { %v735_v52 = vadd.f32 %v725_v41, %v1416_v17 }
 0x3dd   : > { %v650_v43 = vpop.f32.mrf.mxu1 }
 0x3de   : > { %v1076_v44 = vpop.eup %1075  ;;  %v656_v46 = vmax.f32 %v650_v43, 1e-24  ;;  %v755_v63 = vadd.f32 %v744_v54, %v735_v52 }
 0x3df   : > { %v658_v47 = vmul.f32 %v1076_v44, %v655_v39  ;;  %vm664_vm1 = vweird.f32 %v1076_v44 }
 0x3e0   : > { %1077 = vrsqrt.f32 %v656_v46  ;;  %vm665_vm3 = vmor %vm663_vm2, %vm664_vm1  ;;  %vm673_vm5 = vweird.f32 %v656_v46 }
 0x3e1   : > { %v659_v50 = vmul.f32 %v1076_v44, %v658_v47 }
 0x3e3   : > { %v660_v53 = vmul.f32 0.5, %v659_v50  ;;  %v582_v55 = vpop.f32.mrf.mxu3 }
 0x3e4   : > { %v592_v56 = vadd.f32 %v582_v55, %v1412_v15  ;;  %v728_v57 = vpop.f32.mrf.mxu2 }
 0x3e5   : > { %v661_v59 = vsub.f32 1.5, %v660_v53  ;;  %v579_v60 = vpop.f32.mrf.mxu0  ;;  %v736_v7 = vadd.f32 %v728_v57, %v1410_v14 }
 0x3e6   : > { %v1078_v61 = vpop.eup %1077  ;;  %v612_v2 = vadd.f32 %v601_v38, %v592_v56  ;;  %v591_v24 = vadd.f32 %v579_v60, %v1404_v11 }
 0x3e7   : > { %v662_v17 = vmul.f32 %v1076_v44, %v661_v59  ;;  %v668_v3 = vmul.f32 %v1078_v61, %v656_v46  ;;  %v756_v26 = vadd.f32 %v748_v20, %v736_v7  ;;  %vm674_vm4 = vweird.f32 %v1078_v61 }
 0x3e8   : > { %v767_v15 = vsel %vm1537_vm0, %v612_v2, %v755_v63  ;;  %vm675_vm6 = vmor %vm673_vm5, %vm674_vm4  ;;  %v611_v11 = vadd.f32 %v597_v36, %v591_v24 }
 0x3e9   : > { %v666_v8 = vsel %vm665_vm3, %v1076_v44, %v662_v17  ;;  %v669_v19 = vmul.f32 %v1078_v61, %v668_v3  ;;  %771 = vst [vmem:[%s1422_s13 + $0x8] sm:$0xff] %v767_v15 }
 0x3ea   : > { %v677_v21 = vmul.f32 %v666_v8, %v653_v62 }
 0x3eb   : > { %v670_v22 = vmul.f32 0.5, %v669_v19  ;;  %v585_v1 = vpop.f32.mrf.mxu3 }
 0x3ec   : > { %v774_v23 = vsel %vm1537_vm0, %v677_v21, 0.0  ;;  %v593_v25 = vadd.f32 %v585_v1, %v1406_v12  ;;  %v731_v28 = vpop.f32.mrf.mxu2 }
 0x3ed   : > { %776 = vst [vmem:[%s1422_s13 + $0x20] sm:$0xff] %v774_v23  ;;  %v671_v27 = vsub.f32 1.5, %v670_v22  ;;  %v722_v14 = vpop.f32.mrf.mxu0  ;;  %v737_v34 = vadd.f32 %v731_v28, %v1418_v18 }
 0x3ee   : > { %v613_v30 = vadd.f32 %v605_v4, %v593_v25  ;;  %v734_v31 = vadd.f32 %v722_v14, %v1408_v13 }
 0x3ef   : > { %v672_v32 = vmul.f32 %v1078_v61, %v671_v27  ;;  %v757_v36 = vadd.f32 %v752_v5, %v737_v34 }
 0x3f0   : > { %v768_v12 = vsel %vm1537_vm0, %v613_v30, %v756_v26  ;;  %v754_v33 = vadd.f32 %v740_v48, %v734_v31 }
 0x3f1   : > { %v676_v35 = vsel %vm675_vm6, %v1078_v61, %v672_v32  ;;  %772 = vst [vmem:[%s1422_s13 + $0x10] sm:$0xff] %v768_v12 }
 0x3f2   : > { %v678_v9 = vmul.f32 %v676_v35, %v654_v29  ;;  %v766_v0 = vsel %vm1537_vm0, %v611_v11, %v754_v33 }
 0x3f3   : > { %770 = vst [vmem:[%s1422_s13] sm:$0xff] %v766_v0  ;;  %v588_v13 = vpop.f32.mrf.mxu3 }
 0x3f4   : > { %v775_v6 = vsel %vm1537_vm0, %v678_v9, 0.0  ;;  %v594_v10 = vadd.f32 %v588_v13, %v1414_v16 }
 0x3f5   : > { %777 = vst [vmem:[%s1422_s13 + $0x28] sm:$0x1] %v775_v6 }
 0x3f6   : > { %v614_v37 = vadd.f32 %v1530_v40, %v594_v10 }
 0x3f8   : > { %v769_v18 = vsel %vm1537_vm0, %v614_v37, %v757_v36 }
 0x3f9   : > { %773 = vst [vmem:[%s1422_s13 + $0x18] sm:$0xff] %v769_v18 }
 0x3fa PF: > { %s933_s10 = sshll.u32 %s1277_s0, 3  ;;  %s790_s21 = sshll.u32 %s1422_s13, 4  ;;  %s791_s21 = int_to_ptr.vmem [resolvable:$true] %s790_s21 }
 0x3fb   : > { %s789_s12 = scalar_lea.hbm %s1604_s3, %s933_s10  ;;  %s779_s24 = scalar_lea.sflag [#allocation6], %s1353_s9 }
 0x3fc   : > { %s792_s25 = sshll.u32 %s789_s12, 4  ;;  %s1159_s0 = scalar_lea.hbm %s1604_s3, 144  ;;  %s793_s25 = int_to_ptr.hbm [resolvable:$true] %s792_s25 }
 0x3fd   : > { %s1153_s28 = sshra.s32 %s793_s25, 4  ;;  %s1154_s28 = int_to_ptr.hbm [resolvable:$true] %s1153_s28 }
 0x3fe   : > { %s1155_s19 = scalar_lea.hbm %s1154_s28, 48  ;;  %p1160_p10 = scmp.lt.s32.totalorder %s1154_s28, %s1604_s3 }
 0x3ff   : > { %p1156_p7 = scmp.ne.s32.totalorder %s1154_s28, %s1155_s19  ;;  %p1161_p11 = scmp.lt.s32.totalorder %s1159_s0, %s1155_s19 }
 0x401   : > { %p1157_p2 = pnand %p1156_p7, %p1325_p5  ;;  %p1162_p12 = por %p1161_p11, %p1160_p10 }
 0x403   : > { %p1158_p9 = pneg %p1157_p2 }
 0x405   : > { %p1163_p13 = pnand %p1162_p12, %p1158_p9 }
 0x407   : > { %1166 = shalt.err (!%p1163_p13)
}
 0x408   : > { %s1230_s9 = smov 128   ;;  %s1231_s13 = smov 384  }
 0x409   : > { %s1232_s26 = smov 8  }
 0x40a   : > { %987 = dma.vmem_to_hbm [thread:$0]  (%p1325_p5), %s791_s21, 768, %s793_s25, %s779_s24, %s1230_s9, %s1231_s13, %s1232_s26  }
 0x40b PF: > { %p1004_p0 = scmp.ge.s32.totalorder %s1209_s17, 2  ;;  %s807_s30 = sand.u32 1, %s1197_s14  }
 0x40c   : > { %s808_s4 = scalar_lea.sflag [#allocation6], %s807_s30 }
 0x40d   : > { %p998_p3 = pnand %p1004_p0, %p1291_p6 }
 0x40f   : > { %p999_p1 = pneg %p998_p3 }
 0x411   : > { %1192 = dma.done.wait (%p999_p1), %s808_s4, 768  }
 0x412   : > { %1194 = vsyncadd (%p999_p1), %s808_s4, 4294966528  ;;  %p18_p4 = scmp.ge.s32.totalorder %s1308_s27, 5   ;;  %s1613_s14 = smov %s1201_s15 }
 0x413   : > { %s1614_s15 = smov %s1205_s16  ;;  %s1615_s16 = smov %s1321_s5 }
 0x414   : > { %s1616_s17 = smov %s1308_s27  ;;  %20 = sbr.rel (!%p18_p4) target bundleno = 8 (0x8), region = 89 }
 0x419   :  { %814 = vsyncpa [#allocation5], 1 }
 0x41a   :  { %816 = vsyncpa [#allocation5 + $0x1], 1 }
 0x41b   :  { %817 = vsyncpa [#allocation8], 1 }
 0x41c   :  { %818 = vsyncpa [#allocation6], 1 }
 0x41d   :  { %820 = vsyncpa [#allocation6 + $0x1], 1 }

</bundles_post_ra>
